<compile_context>
chip_gen: v6e
topology: v6e:2x2x1
jax: 0.10.0
libtpu: 0.0.40
codegen_flags: <defaults>
</compile_context>

<pallas_src>
import functools

import jax
import jax.numpy as jnp
from jax import lax
from jax.experimental import pallas as pl
from jax.experimental.pallas import tpu as pltpu

EPS = 1e-5
_LANE = 128
_HEADROOM = 2 * 1024 * 1024        # slack for Pallas-internal scratch
_MIN_VMEM_LIMIT = 16 * 1024 * 1024
_MANY_STEPS = 16                   # grid-step threshold for 3-deep input buffering


# ----------------------------- helpers ---------------------------------------


def _round_up(n, m):
    return -(-n // m) * m


def _sublane(itemsize):
    # f32 -> 8, bf16 -> 16, int8/fp8 -> 32 packed rows per sublane tile.
    return 8 * max(1, 4 // itemsize)


def _vmem_capacity_bytes():
    try:
        return int(pltpu.get_tpu_info().vmem_capacity_bytes)
    except Exception:
        return 64 * 1024 * 1024    # conservative: v7x physical per-core VMEM


def _defaults(tile_target, ceiling):
    cap = _vmem_capacity_bytes()
    if ceiling is None:
        ceiling = min(cap // 2, 64 * 1024 * 1024)
    if tile_target is None:
        # ~8 MiB blocks on 128 MiB-VMEM parts (v5e/v6e), ~4 MiB on v7x.
        tile_target = (8 * 1024 * 1024 if cap >= 96 * 1024 * 1024
                       else 4 * 1024 * 1024)
    return tile_target, ceiling


def _lane_tiles(inner):
    # Legal lane tiles: the full extent, or a multiple of 128 (largest first).
    cands = {inner}
    t = _LANE
    while t < inner:
        cands.add(t)
        t *= 2
    return sorted(cands, reverse=True)


def _padded3(bo, d, ti, itemsize):
    return bo * _round_up(d, _sublane(itemsize)) * _round_up(ti, _LANE) * itemsize


def _padded2(tm, d, itemsize):
    return _round_up(tm, _sublane(itemsize)) * _round_up(d, _LANE) * itemsize


def _in_spec(block_shape, index_map, deep):
    """Input BlockSpec; ask for 3-deep pipelining on long streaming grids."""
    if deep:
        try:
            return pl.BlockSpec(block_shape, index_map,
                                pipeline_mode=pl.Buffered(3))
        except Exception:   # pipeline_mode / Buffered unavailable -> default 2
            pass
    return pl.BlockSpec(block_shape, index_map)


# ----------------------------- kernels ---------------------------------------


def _l2norm_mid_kernel(x_ref, o_ref):
    # x_ref: (bo, D, ti).  Reduce over the middle (channel) axis; the trailing
    # lane axis stays dense so loads/stores are full-width.
    x = x_ref[...].astype(jnp.float32)
    norm = jnp.sqrt(jnp.sum(x * x, axis=1, keepdims=True))
    # Exact reciprocal (VPU path, not the EUP vrcp); the norm tensor is only
    # 1/D of the block so this is negligible in an HBM-bound kernel.
    inv = pl.reciprocal(norm + EPS, approx=False)
    o_ref[...] = (x * inv).astype(o_ref.dtype)


def _l2norm_last_kernel(x_ref, o_ref):
    # x_ref: (tm, D).  Reduction axis is the last (lane) axis.
    x = x_ref[...].astype(jnp.float32)
    norm = jnp.sqrt(jnp.sum(x * x, axis=-1, keepdims=True))
    inv = pl.reciprocal(norm + EPS, approx=False)
    o_ref[...] = (x * inv).astype(o_ref.dtype)


def _ssq_kernel(x_ref, ssq_ref, *, d_total, need_mask):
    # Two-pass path, pass 1: accumulate sum-of-squares over D chunks.
    k = pl.program_id(2)

    @pl.when(k == 0)
    def _():
        ssq_ref[...] = jnp.zeros_like(ssq_ref)

    x = x_ref[...].astype(jnp.float32)
    if need_mask:
        # Ragged last D-block: zero the padded reduction rows so garbage
        # reads never reach the accumulator.
        td = x_ref.shape[1]
        rows = lax.broadcasted_iota(jnp.int32, x.shape, 1) + k * td
        x = jnp.where(rows < d_total, x, 0.0)
    ssq_ref[...] += jnp.sum(x * x, axis=1, keepdims=True)


def _scale_kernel(x_ref, ssq_ref, o_ref):
    # Two-pass path, pass 2: o = x / (sqrt(ssq) + eps).
    x = x_ref[...].astype(jnp.float32)
    inv = pl.reciprocal(jnp.sqrt(ssq_ref[...]) + EPS, approx=False)
    o_ref[...] = (x * inv).astype(o_ref.dtype)


# --------------------------- tile selection -----------------------------------


def _choose_tiles_3d(outer, d, inner, itemsize, tile_target, ceiling):
    """(bo, ti) for the single-pass mid-kernel, or None if it cannot fit."""
    ti = None
    for cand in _lane_tiles(inner):
        if _padded3(1, d, cand, itemsize) <= tile_target:
            ti = cand
            break
    if ti is None:
        ti = min(inner, _LANE)
    per = _padded3(1, d, ti, itemsize)
    bo = max(1, min(outer, tile_target // max(per, 1)))

    # v7x megacore: keep >= 2 blocks on the parallel axes when possible.
    if pl.cdiv(outer, bo) * pl.cdiv(inner, ti) == 1:
        if outer > 1:
            bo = pl.cdiv(outer, 2)
        elif inner > _LANE:
            ti = max(_LANE, _round_up(pl.cdiv(inner, 2), _LANE))

    def fits(bo_, ti_):
        blk = _padded3(bo_, d, ti_, itemsize)
        f32 = _padded3(bo_, d, ti_, 4)
        # in + out, double buffered, plus ~2 block-sized f32 temporaries.
        return 4 * blk + 2 * f32 <= ceiling

    while not fits(bo, ti):
        if bo > 1:
            bo = (bo + 1) // 2
        elif ti > _LANE:
            ti = max(_LANE, _round_up(ti // 2, _LANE))
        else:
            return None     # even (1, D, 128) is too big -> D-tiled two-pass
    return bo, ti


def _choose_tiles_dtiled(outer, d, inner, itemsize, tile_target, ceiling):
    """(bo, td, ti) for the two-pass D-tiled path."""
    g = _sublane(itemsize)
    ti = None
    for cand in _lane_tiles(inner):
        if _padded3(1, g, cand, itemsize) <= tile_target:
            ti = cand
            break
    if ti is None:
        ti = min(inner, _LANE)
    per_g = _padded3(1, g, ti, itemsize)
    td = min(_round_up(d, g), g * max(1, tile_target // max(per_g, 1)))
    per_b = _padded3(1, td, ti, itemsize)
    bo = max(1, min(outer, tile_target // max(per_b, 1)))

    # v7x megacore: >= 2 blocks on the parallel (i, j) axes when possible.
    if pl.cdiv(outer, bo) * pl.cdiv(inner, ti) == 1:
        if outer > 1:
            bo = pl.cdiv(outer, 2)
        elif inner > _LANE:
            ti = max(_LANE, _round_up(pl.cdiv(inner, 2), _LANE))

    def fits(bo_, td_, ti_):
        blk = _padded3(bo_, td_, ti_, itemsize)
        f32 = _padded3(bo_, td_, ti_, 4)
        ssq = _padded3(bo_, 1, ti_, 4)
        # pass 2 is the larger footprint: x(in) + out + ssq(in), double
        # buffered, plus ~2 block-sized f32 temporaries.
        return 4 * blk + 2 * ssq + 2 * f32 <= ceiling

    while not fits(bo, td, ti):
        if bo > 1:
            bo = (bo + 1) // 2
        elif td > g:
            td = max(g, _round_up(td // 2, g))
        elif ti > _LANE:
            ti = max(_LANE, _round_up(ti // 2, _LANE))
        else:
            break           # minimal tiles already; just request the limit
    return bo, td, ti


def _choose_tile_rows(rows, d, itemsize, tile_target, ceiling):
    g = _sublane(itemsize)
    per = _padded2(g, d, itemsize)
    tm = g * max(1, tile_target // max(per, 1))
    if tm >= rows:
        tm = rows           # full extent is always a legal block shape
    # v7x megacore: give both cores work when the shape allows.
    if pl.cdiv(rows, tm) == 1 and rows > g:
        tm = _round_up(pl.cdiv(rows, 2), g)

    def fits(tm_):
        blk = _padded2(tm_, d, itemsize)
        f32 = _padded2(tm_, d, 4)
        return 4 * blk + 2 * f32 <= ceiling

    while not fits(tm) and tm > g:
        tm = max(g, _round_up(tm // 2, g))
    # Note: if D alone is so large that a (g, D) block exceeds VMEM, the
    # last-axis reduction would also need D-chunking; not a shape this module
    # produces, so we accept the oversized request in that corner case.
    return tm


# --------------------------- pallas_call wrappers ------------------------------


def _l2normalize_3d(x3, tile_target, ceiling):
    outer, d, inner = x3.shape
    itemsize = x3.dtype.itemsize
    tiles = _choose_tiles_3d(outer, d, inner, itemsize, tile_target, ceiling)
    if tiles is None:
        return _l2normalize_3d_two_pass(x3, tile_target, ceiling)
    bo, ti = tiles
    grid = (pl.cdiv(outer, bo), pl.cdiv(inner, ti))
    steps = grid[0] * grid[1]

    blk = _padded3(bo, d, ti, itemsize)
    f32 = _padded3(bo, d, ti, 4)
    deep = steps >= _MANY_STEPS and 5 * blk + 2 * f32 <= ceiling
    n_in = 3 if deep else 2
    vmem_limit = int(max((n_in + 2) * blk + 2 * f32 + _HEADROOM,
                         _MIN_VMEM_LIMIT))

    return pl.pallas_call(
        _l2norm_mid_kernel,
        out_shape=jax.ShapeDtypeStruct(x3.shape, x3.dtype),
        grid_spec=pltpu.PrefetchScalarGridSpec(
            num_scalar_prefetch=0,
            grid=grid,
            in_specs=[_in_spec((bo, d, ti), lambda i, j: (i, 0, j), deep)],
            out_specs=pl.BlockSpec((bo, d, ti), lambda i, j: (i, 0, j)),
        ),
        compiler_params=pltpu.CompilerParams(
            dimension_semantics=("parallel", "parallel"),
            vmem_limit_bytes=vmem_limit,
        ),
    )(x3)


def _l2normalize_3d_two_pass(x3, tile_target, ceiling):
    outer, d, inner = x3.shape
    itemsize = x3.dtype.itemsize
    bo, td, ti = _choose_tiles_dtiled(outer, d, inner, itemsize,
                                      tile_target, ceiling)
    gi, gj, gk = pl.cdiv(outer, bo), pl.cdiv(inner, ti), pl.cdiv(d, td)
    steps = gi * gj * gk

    blk = _padded3(bo, td, ti, itemsize)
    f32 = _padded3(bo, td, ti, 4)
    ssq_blk = _padded3(bo, 1, ti, 4)
    deep = (steps >= _MANY_STEPS
            and 5 * blk + 2 * ssq_blk + 2 * f32 <= ceiling)
    n_in = 3 if deep else 2
    vmem_limit = int(max((n_in + 2) * blk + 2 * ssq_blk + 2 * f32 + _HEADROOM,
                         _MIN_VMEM_LIMIT))
    need_mask = (d % td) != 0

    # Pass 1: ssq[o, 0, i] = sum_c x[o, c, i]^2 (reduction axis last, "arbitrary").
    ssq = pl.pallas_call(
        functools.partial(_ssq_kernel, d_total=d, need_mask=need_mask),
        out_shape=jax.ShapeDtypeStruct((outer, 1, inner), jnp.float32),
        grid_spec=pltpu.PrefetchScalarGridSpec(
            num_scalar_prefetch=0,
            grid=(gi, gj, gk),
            in_specs=[_in_spec((bo, td, ti), lambda i, j, k: (i, k, j), deep)],
            out_specs=pl.BlockSpec((bo, 1, ti), lambda i, j, k: (i, 0, j)),
        ),
        compiler_params=pltpu.CompilerParams(
            dimension_semantics=("parallel", "parallel", "arbitrary"),
            vmem_limit_bytes=vmem_limit,
        ),
    )(x3)

    # Pass 2: o = x / (sqrt(ssq) + eps); fully parallel elementwise stream.
    return pl.pallas_call(
        _scale_kernel,
        out_shape=jax.ShapeDtypeStruct(x3.shape, x3.dtype),
        grid_spec=pltpu.PrefetchScalarGridSpec(
            num_scalar_prefetch=0,
            grid=(gi, gj, gk),
            in_specs=[
                _in_spec((bo, td, ti), lambda i, j, k: (i, k, j), deep),
                pl.BlockSpec((bo, 1, ti), lambda i, j, k: (i, 0, j)),
            ],
            out_specs=pl.BlockSpec((bo, td, ti), lambda i, j, k: (i, k, j)),
        ),
        compiler_params=pltpu.CompilerParams(
            dimension_semantics=("parallel", "parallel", "parallel"),
            vmem_limit_bytes=vmem_limit,
        ),
    )(x3, ssq)


def _l2normalize_2d(x2, tile_target, ceiling):
    rows, d = x2.shape
    itemsize = x2.dtype.itemsize
    tm = _choose_tile_rows(rows, d, itemsize, tile_target, ceiling)
    grid = (pl.cdiv(rows, tm),)

    blk = _padded2(tm, d, itemsize)
    f32 = _padded2(tm, d, 4)
    deep = grid[0] >= _MANY_STEPS and 5 * blk + 2 * f32 <= ceiling
    n_in = 3 if deep else 2
    vmem_limit = int(max((n_in + 2) * blk + 2 * f32 + _HEADROOM,
                         _MIN_VMEM_LIMIT))

    return pl.pallas_call(
        _l2norm_last_kernel,
        out_shape=jax.ShapeDtypeStruct(x2.shape, x2.dtype),
        grid_spec=pltpu.PrefetchScalarGridSpec(
            num_scalar_prefetch=0,
            grid=grid,
            in_specs=[_in_spec((tm, d), lambda i: (i, 0), deep)],
            out_specs=pl.BlockSpec((tm, d), lambda i: (i, 0)),
        ),
        compiler_params=pltpu.CompilerParams(
            dimension_semantics=("parallel",),
            vmem_limit_bytes=vmem_limit,
        ),
    )(x2)


def l2_normalize(x, dim, *, tile_target_bytes=None, vmem_ceiling_bytes=None):
    """Equivalent of L2Normalize(dim).forward(x): x / (||x||_2 + 1e-5)."""
    ndim = x.ndim
    dim = dim % ndim
    shape = x.shape
    outer = 1
    for s in shape[:dim]:
        outer *= s
    d = shape[dim]
    inner = 1
    for s in shape[dim + 1:]:
        inner *= s

    tile_target, ceiling = _defaults(tile_target_bytes, vmem_ceiling_bytes)

    if inner == 1:
        # Reduction axis is (effectively) the last axis: lane reduce.  If
        # d < 128 stores are lane-masked (documented cliff) but still correct.
        out = _l2normalize_2d(x.reshape(outer, d), tile_target, ceiling)
    else:
        # Native layout, no transpose: reduce over the middle axis, keep the
        # trailing (spatial) axis lane-dense.
        out = _l2normalize_3d(x.reshape(outer, d, inner), tile_target, ceiling)
    return out.reshape(shape)


if __name__ == "__main__":
    key = jax.random.PRNGKey(0)

    def ref_fn(x, dim):
        xf = x.astype(jnp.float32)
        norm = jnp.sqrt(jnp.sum(xf * xf, axis=dim, keepdims=True))
        return (xf / (norm + EPS)).astype(x.dtype)

    def check(x, dim, **kw):
        y = jax.block_until_ready(l2_normalize(x, dim, **kw))
        assert y.shape == x.shape and y.dtype == x.dtype
        err = jnp.max(jnp.abs(y.astype(jnp.float32)
                              - ref_fn(x, dim).astype(jnp.float32)))
        assert float(err) < 1e-5, float(err)

    k0, k1, k2, k3 = jax.random.split(key, 4)

    # 1) NCHW input, normalize over channels (dim=1), like the PyTorch module.
    check(jax.random.normal(k0, (2, 4, 16, 16), dtype=jnp.float32), 1)

    # 2) Last-axis reduction path.
    check(jax.random.normal(k1, (2, 4, 16, 16), dtype=jnp.float32), 3)

    # 3) Awkward shape + tiny tile target: ragged cdiv tiling, multi-block grid.
    check(jax.random.normal(k2, (2, 6, 10, 20), dtype=jnp.float32), 1,
          tile_target_bytes=4 * 1024)

    # 4) Tiny VMEM ceiling forces the D-tiled two-pass fallback, with a ragged
    #    reduction edge (68 % 8 != 0) and enough grid steps to exercise the
    #    Buffered(3) input pipelining.
    check(jax.random.normal(k3, (2, 68, 16, 16), dtype=jnp.float32), 1,
          tile_target_bytes=8 * 1024, vmem_ceiling_bytes=96 * 1024)

    print("KERNEL_OK")
</pallas_src>

<mosaic_0001>
module attributes {stable_mosaic.version = 11 : i64} {
  func.func @_l2norm_mid_kernel(%arg0: i32, %arg1: i32, %arg2: memref<1x4x256xf32, #tpu.memory_space<vmem>>, %arg3: memref<1x4x256xf32, #tpu.memory_space<vmem>>) attributes {dimension_semantics = [#tpu.dimension_semantics<parallel>, #tpu.dimension_semantics<parallel>], iteration_bounds = array<i64: 2, 1>, scalar_prefetch = 0 : i64, scratch_operands = 0 : i64, tpu.core_type = #tpu.core_type<tc>, window_params = [{transform_indices = @transform_0, window_bounds = array<i64: 1, 4, 256>}, {transform_indices = @transform_1, window_bounds = array<i64: 1, 4, 256>}]} {
    %c0 = arith.constant 0 : index
    %c0_0 = arith.constant 0 : index
    %c0_1 = arith.constant 0 : index
    %0 = vector.load %arg2[%c0, %c0_0, %c0_1] : memref<1x4x256xf32, #tpu.memory_space<vmem>>, vector<1x4x256xf32>
    %1 = arith.mulf %0, %0 : vector<1x4x256xf32>
    %cst = arith.constant dense<0.000000e+00> : vector<1x256xf32>
    %2 = vector.multi_reduction <add>, %1, %cst [1] : vector<1x4x256xf32> to vector<1x256xf32>
    %3 = vector.shape_cast %2 : vector<1x256xf32> to vector<1x1x256xf32>
    %4 = math.sqrt %3 : vector<1x1x256xf32>
    %cst_2 = arith.constant 9.99999974E-6 : f32
    %5 = vector.broadcast %cst_2 : f32 to vector<1x1x256xf32>
    %6 = arith.addf %4, %5 : vector<1x1x256xf32>
    %7 = tpu.reciprocal %6 : vector<1x1x256xf32> -> vector<1x1x256xf32>
    %8 = vector.broadcast %7 : vector<1x1x256xf32> to vector<1x4x256xf32>
    %9 = arith.mulf %0, %8 : vector<1x4x256xf32>
    %c0_3 = arith.constant 0 : index
    %c0_4 = arith.constant 0 : index
    %c0_5 = arith.constant 0 : index
    %10 = vector.load %arg3[%c0_3, %c0_4, %c0_5] : memref<1x4x256xf32, #tpu.memory_space<vmem>>, vector<1x4x256xf32>
    tpu.vector_store %arg3[%c0_3, %c0_4, %c0_5], %9 {strides = array<i32>} : memref<1x4x256xf32, #tpu.memory_space<vmem>>, vector<1x4x256xf32>,
    return
  }
  func.func @transform_0(%arg0: i32, %arg1: i32) -> (i32, i32, i32) {
    %c0_i32 = arith.constant 0 : i32
    %c0_i32_0 = arith.constant 0 : i32
    return %arg0, %c0_i32, %arg1 : i32, i32, i32
  }
  func.func @transform_1(%arg0: i32, %arg1: i32) -> (i32, i32, i32) {
    %c0_i32 = arith.constant 0 : i32
    %c0_i32_0 = arith.constant 0 : i32
    return %arg0, %c0_i32, %arg1 : i32, i32, i32
  }
}

</mosaic_0001>

<bundles_post_ra>
// kernel: tpu_custom_call.1
= control target key start
LH: loop header
LB: loop body
LE: loop exit
PB: predicated region body
PF: predicated region fallthrough
CT: control target
= control target key end

     0   :  { %6 = vsyncpa [#allocation3], 0  ;;  %s645_s0 = inlined_call_operand.hbm [shape: f32[2,4,256], index: 0, kind: input, shape index: {}]   ;;  %s646_s1 = inlined_call_operand.hbm [shape: f32[2,4,256], index: 1, kind: output, shape index: {}]  }
   0x1   :  { %8 = vsyncpa [#allocation3 + $0x1], 0 }
   0x2   :  { %9 = vsyncpa [#allocation4], 0 }
   0x3   :  { %11 = vsyncpa [#allocation4 + $0x1], 0  ;;  %s507_s6 = smov 0   ;;  %s509_s7 = smov 0  }
   0x4   :  { %s511_s8 = smov 0   ;;  %s513_s9 = smov 0  }
   0x5   :  { %s515_s10 = smov 0   ;;  %s517_s11 = smov 0  }
   0x6 LB: > { %s298_s12 = sadd.s32 4294967295, %s493_s11   ;;  %s299_s13 = sadd.s32 4294967294, %s493_s11   ;;  %s493_s11 = sphi %s517_s11, %s17_s11   ;;  %s489_s10 = sphi %s515_s10, %s658_s10   ;;  %s485_s9 = sphi %s513_s9, %s657_s9   ;;  %s481_s8 = sphi %s511_s8, %s656_s8   ;;  %s477_s7 = sphi %s509_s7, %s655_s7   ;;  %s473_s6 = sphi %s507_s6, %s654_s6  }
   0x7   : > { %s29_s14 = sadd.s32 1, %s489_s10  ;;  %s38_s15 = sadd.s32 1, %s481_s8 }
   0x8   : > { %p31_p0 = scmp.ge.s32.totalorder %s29_s14, 2  ;;  %p45_p1 = scmp.ne.s32.totalorder %s481_s8, %s477_s7 }
   0x9   : > { %p46_p2 = scmp.eq.s32.totalorder %s493_s11, 0  ;;  %p51_p3 = scmp.ne.s32.totalorder %s477_s7, %s473_s6 }
   0xa   : > { %s660_s14 = smov (%p31_p0, %s29_s14), 0  ;;  %p52_p5 = scmp.eq.s32.totalorder %s298_s12, 0 }
   0xb   : > { %p548_p4 = por %p46_p2, %p45_p1  ;;  %s33_s17 = ssub.s32 %s489_s10, %s660_s14 }
   0xc   : > { %p77_p6 = scmp.eq.s32.totalorder %s298_s12, 1  ;;  %p36_p7 = scmp.eq.s32.totalorder %s33_s17, 0 }
   0xd   : > { %p554_p8 = por %p52_p5, %p51_p3  ;;  %p83_p10 = scmp.eq.s32.totalorder %s299_s13, 1 }
   0xe   : > { %p558_p9 = por %p77_p6, %p45_p1  ;;  %p327_p13 = scmp.lt.s32.totalorder %s493_s11, 2 }
   0xf   : > { %s563_s20 = scalar_select %p36_p7, %s481_s8, %s38_s15  }
  0x10   : > { %p565_p11 = por %p83_p10, %p51_p3  ;;  %s103_s22 = sand.u32 1, %s481_s8  }
  0x11   : > { %s302_s23 = sshll.u32 %s103_s22, 3  ;;  %s313_s24 = sshll.u32 %s489_s10, 7 }
  0x12   : > { %s650_s21 = scalar_select %p565_p11, 1, 0 }
  0x13   : > { %s115_s27 = scalar_lea.hbm %s645_s0, %s313_s24  ;;  %s107_s28 = scalar_lea.vmem [#allocation2], %s302_s23 }
  0x14   : > { %s117_s29 = sshll.u32 %s107_s28, 4  ;;  %p578_p0 = pnand %p327_p13, %p548_p4  ;;  %s118_s29 = int_to_ptr.vmem [resolvable:$true] %s117_s29 }
  0x15   : > { %p305_p1 = scmp.ge.s32.totalorder %s493_s11, 1  ;;  %p122_p2 = scmp.lt.s32.totalorder %s493_s11, 3 }
  0x16   : > { %s104_s2 = scalar_lea.sflag [#allocation3], %s103_s22  ;;  %p387_p3 = pneg %p578_p0 }
  0x17   : > { %s398_s3 = scalar_lea.vmem %s118_s29, 128  ;;  %s495_s4 = smov [#allocation2]  }
  0x18   : > { %p399_p5 = scmp.ne.s32.totalorder %s118_s29, %s398_s3  ;;  %s403_s5 = sshll.u32 %s495_s4, 4  ;;  %s404_s5 = int_to_ptr.vmem [resolvable:$false] %s403_s5 }
  0x19   : > { %s405_s12 = scalar_lea.vmem %s404_s5, 256  ;;  %p406_p10 = scmp.lt.s32.totalorder %s118_s29, %s404_s5 }
  0x1a   : > { %p401_p6 = pnand %p399_p5, %p387_p3  ;;  %p407_p12 = scmp.lt.s32.totalorder %s405_s12, %s398_s3 }
  0x1c   : > { %p402_p7 = pneg %p401_p6  ;;  %p408_p4 = por %p407_p12, %p406_p10 }
  0x1e   : > { %p409_p13 = pnand %p408_p4, %p402_p7 }
  0x20   : > { %412 = shalt.err (!%p409_p13)
}
  0x21   : > { %322 = dma.hbm_to_vmem [thread:$0]  (!%p578_p0), %s115_s27, 128, %s118_s29, %s104_s2  }
  0x22   : > { %p123_p11 = pnand %p305_p1, %p122_p2 }
  0x23   : > { %s593_s13 = sand.u32 (!%p123_p11), 1, %s477_s7  }
  0x24   : > { %126 = sbr.rel (%p123_p11) target bundleno = 111 (0x6f), region = 24  ;;  %s306_s15 = sshll.u32 (!%p123_p11), %s593_s13, 3 }
  0x25   : > { %s129_s16 = scalar_lea.sflag (!%p123_p11), [#allocation3], %s593_s13  ;;  %s132_s17 = scalar_lea.vmem (!%p123_p11), [#allocation2], %s306_s15 }
  0x29   : > { %464 = dma.done.wait (%p554_p8), %s129_s16, 128  }
  0x2a   : > { %466 = vsyncadd (%p554_p8), %s129_s16, 4294967168  ;;  %v153_v0 = vld [vmem:[%s132_s17] sm:$0xff]  ;;  %vm158_vm0 = vcmask 1043456   ;;  %s150_s18 = scalar_lea.vmem [#allocation5], %s306_s15  ;;  %s314_s23 = sshll.u32 %s485_s9, 7 }
  0x2b   : > { %v154_v1 = vmul.f32 %v153_v0, %v153_v0  ;;  %s214_s22 = sshll.u32 %s150_s18, 4  ;;  %s212_s26 = scalar_lea.hbm %s646_s1, %s314_s23  ;;  %s215_s22 = int_to_ptr.vmem [resolvable:$true] %s214_s22 }
  0x2c   : > { %s198_s27 = scalar_lea.sflag [#allocation4], %s593_s13  ;;  %s413_s28 = scalar_lea.vmem %s215_s22, 128 }
  0x2d   : > { %v156_v2 = vcombine.high %v154_v1, %v154_v1  ;;  %v159_v3 = vsel %vm158_vm0, %v154_v1, 0.0  ;;  %p414_p8 = scmp.ne.s32.totalorder %s215_s22, %s413_s28  ;;  %s496_s29 = smov [#allocation5]  }
  0x2e   : > { %v160_v4 = vrot.slane %v159_v3, 4  ;;  %s417_s30 = sshll.u32 %s496_s29, 4  ;;  %s418_s30 = int_to_ptr.vmem [resolvable:$false] %s417_s30 }
  0x2f   : > { %v166_v5 = vsel %vm158_vm0, %v156_v2, 0.0  ;;  %p415_p11 = pnand %p414_p8, %p558_p9  ;;  %s419_s2 = scalar_lea.vmem %s418_s30, 256 }
  0x30   : > { %v161_v6 = vadd.f32 %v160_v4, %v159_v3  ;;  %v167_v7 = vrot.slane %v166_v5, 4  ;;  %p420_p0 = scmp.lt.s32.totalorder %s215_s22, %s418_s30  ;;  %p421_p1 = scmp.lt.s32.totalorder %s419_s2, %s413_s28 }
  0x31   : > { %p416_p12 = pneg %p415_p11 }
  0x32   : > { %v162_v8 = vrot.slane %v161_v6, 2  ;;  %v168_v9 = vadd.f32 %v167_v7, %v166_v5  ;;  %p422_p2 = por %p421_p1, %p420_p0 }
  0x34   : > { %v163_v10 = vadd.f32 %v162_v8, %v161_v6  ;;  %v169_v11 = vrot.slane %v168_v9, 2  ;;  %p423_p3 = pnand %p422_p2, %p416_p12 }
  0x36   : > { %v164_v12 = vrot.slane %v163_v10, 1  ;;  %v170_v13 = vadd.f32 %v169_v11, %v168_v9 }
  0x38   : > { %v165_v14 = vadd.f32 %v164_v12, %v163_v10  ;;  %v171_v15 = vrot.slane %v170_v13, 1 }
  0x3a   : > { %v172_v16 = vadd.f32 %v171_v15, %v170_v13  ;;  %377 = vrsqrt.f32 %v165_v14  ;;  %vm175_vm1 = vcmp.eq.f32.partialorder %v165_v14, inf  ;;  %v178_v18 = vand.u32 2147483648, %v165_v14 }
  0x3b   : > { %vm177_vm2 = vcmp.eq.f32.partialorder %v165_v14, 0.0 }
  0x3c   : > { %379 = vrsqrt.f32 %v172_v16  ;;  %vm182_vm3 = vcmp.eq.f32.partialorder %v172_v16, inf  ;;  %v185_v21 = vand.u32 2147483648, %v172_v16  ;;  %vm184_vm4 = vcmp.eq.f32.partialorder %v172_v16, 0.0 }
  0x47   : > { %v378_v17 = vpop.eup %377 }
  0x48   : > { %v174_v19 = vmul.f32 %v378_v17, %v165_v14 }
  0x49   : > { %v380_v20 = vpop.eup %379 }
  0x4a   : > { %v176_v22 = vsel %vm175_vm1, %v165_v14, %v174_v19  ;;  %v181_v23 = vmul.f32 %v380_v20, %v172_v16 }
  0x4b   : > { %v179_v24 = vsel %vm177_vm2, %v178_v18, %v176_v22 }
  0x4c   : > { %v183_v25 = vsel %vm182_vm3, %v172_v16, %v181_v23  ;;  %v187_v26 = vadd.f32 1e-05, %v179_v24 }
  0x4d   : > { %v186_v27 = vsel %vm184_vm4, %v185_v21, %v183_v25 }
  0x4e   : > { %v188_v28 = vadd.f32 1e-05, %v186_v27  ;;  %381 = vrcp.f32 %v187_v26 }
  0x50   : > { %383 = vrcp.f32 %v188_v28 }
  0x5b   : > { %v382_v29 = vpop.eup %381 }
  0x5d   : > { %v384_v30 = vpop.eup %383 }
  0x5e   : > { %v193_v31 = vcombine.low %v382_v29, %v384_v30 }
  0x60   : > { %v195_v32 = vmul.f32 %v193_v31, %v153_v0 }
  0x62   : > { %196 = vst [vmem:[%s150_s18] sm:$0xff] %v195_v32 }
  0x63   : > { %426 = shalt.err (!%p423_p3)
}
  0x64   : > { %s427_s9 = scalar_lea.hbm %s212_s26, 128  ;;  %s431_s5 = scalar_lea.hbm %s646_s1, 256 }
  0x65   : > { %p428_p5 = scmp.ne.s32.totalorder %s212_s26, %s427_s9  ;;  %p432_p10 = scmp.lt.s32.totalorder %s212_s26, %s646_s1 }
  0x66   : > { %p433_p4 = scmp.lt.s32.totalorder %s431_s5, %s427_s9 }
  0x67   : > { %p429_p6 = pnand %p428_p5, %p558_p9 }
  0x68   : > { %p434_p13 = por %p433_p4, %p432_p10 }
  0x69   : > { %p430_p7 = pneg %p429_p6 }
  0x6b   : > { %p435_p8 = pnand %p434_p13, %p430_p7 }
  0x6d   : > { %438 = shalt.err (!%p435_p8)
}
  0x6e   : > { %317 = dma.vmem_to_hbm [thread:$0]  (%p558_p9), %s215_s22, 128, %s212_s26, %s198_s27  }
  0x6f PF: > { %s226_s15 = sand.u32 1, %s473_s6   ;;  %p652_p11 = scmp.ne.s32.totalorder %s650_s21, 0 }
  0x70   : > { %p653_p12 = scmp.ge.s32.totalorder %s493_s11, 2  ;;  %s227_s16 = scalar_lea.sflag [#allocation4], %s226_s15 }
  0x72   : > { %p324_p0 = pnand %p653_p12, %p652_p11 }
  0x74   : > { %p325_p1 = pneg %p324_p0 }
  0x76   : > { %468 = dma.done.wait (%p325_p1), %s227_s16, 128  }
  0x77   : > { %470 = vsyncadd (%p325_p1), %s227_s16, 4294967168  ;;  %s17_s11 = sadd.s32 1, %s493_s11   ;;  %s654_s6 = smov %s477_s7 }
  0x78   : > { %p14_p2 = scmp.ge.s32.totalorder %s17_s11, 4   ;;  %s655_s7 = smov %s481_s8 }
  0x79   : > { %s656_s8 = smov %s563_s20  ;;  %s657_s9 = smov %s489_s10 }
  0x7a   : > { %s658_s10 = smov %s660_s14  ;;  %16 = sbr.rel (!%p14_p2) target bundleno = 6 (0x6), region = 69 }
  0x7f   :  { %232 = vsyncpa [#allocation3], 1 }
  0x80   :  { %234 = vsyncpa [#allocation3 + $0x1], 1 }
  0x81   :  { %235 = vsyncpa [#allocation4], 1 }
  0x82   :  { %237 = vsyncpa [#allocation4 + $0x1], 1 }

</bundles_post_ra>
